<compile_context>
chip_gen: v5e
topology: v5e:2x2
jax: 0.10.0
libtpu: 0.0.40
codegen_flags: <defaults>
</compile_context>

<pallas_src>
import jax
import jax.numpy as jnp
from jax.experimental import pallas as pl
from jax.experimental.pallas import tpu as pltpu

LEAKY_SLOPE = 0.01  # torch.nn.LeakyReLU default negative_slope
LANE = 128
SUBLANE = 8


def _round_up(n, m):
    return (n + m - 1) // m * m


def _leaky_relu(x):
    return jnp.where(x >= 0, x, LEAKY_SLOPE * x)


def basic_mlp_kernel(x_ref, w1_ref, b1_ref, w2_ref, b2_ref, w3_ref, b3_ref, o_ref):
    # x tile: (TB, in_ch) f32 straight from HBM; cast to the MXU compute dtype
    # (bf16) on the VPU inside the kernel.  Three MXU matmuls with f32
    # accumulation; bias + LeakyReLU on the VPU in f32 (safe on v5e).
    x = x_ref[...].astype(w1_ref.dtype)

    h = jnp.dot(x, w1_ref[...], preferred_element_type=jnp.float32) + b1_ref[...]
    h = _leaky_relu(h)

    h = jnp.dot(h.astype(w2_ref.dtype), w2_ref[...],
                preferred_element_type=jnp.float32) + b2_ref[...]
    h = _leaky_relu(h)

    out = jnp.dot(h.astype(w3_ref.dtype), w3_ref[...],
                  preferred_element_type=jnp.float32) + b3_ref[...]
    o_ref[...] = out.astype(o_ref.dtype)   # bf16 writeback (half the bytes)


def prepare_params(params, compute_dtype=jnp.bfloat16):
    """One-time prep: transpose PyTorch (out, in) weights to (in, out),
    zero-pad the *output* feature dims to the 128-lane boundary, cast weights
    to the MXU compute dtype.  w1 keeps its K dim at in_channels so x needs no
    feature-dim padding.  Do this at parameter-load time, NOT per call."""
    in_ch = params["w1"].shape[1]
    out_ch = params["w3"].shape[0]
    cp = _round_up(in_ch, LANE)   # padded hidden width
    op = _round_up(out_ch, LANE)  # padded output width (lane-dense stores)

    def pad_w(w, rows, cols):
        wt = jnp.asarray(w, jnp.float32).T                      # (in, out)
        wt = jnp.pad(wt, ((0, rows - wt.shape[0]), (0, cols - wt.shape[1])))
        return wt.astype(compute_dtype)

    def pad_b(b, cols):
        b = jnp.asarray(b, jnp.float32)
        return jnp.pad(b, (0, cols - b.shape[0]))[None, :]      # (1, cols) f32

    return {
        "w1": pad_w(params["w1"], in_ch, cp),   # (in_ch, cp): no K-dim pad
        "b1": pad_b(params["b1"], cp),
        "w2": pad_w(params["w2"], cp, cp),
        "b2": pad_b(params["b2"], cp),
        "w3": pad_w(params["w3"], cp, op),
        "b3": pad_b(params["b3"], op),
        "in_channels": in_ch,
        "out_channels": out_ch,
        "cp": cp,
        "op": op,
        "compute_dtype": compute_dtype,
    }


def basic_mlp(x, prep, *, block_b=2048):
    """x: (B, in_channels) float32.  prep: output of prepare_params()."""
    B, c_in = x.shape
    assert c_in == prep["in_channels"]
    cp, op = prep["cp"], prep["op"]
    out_ch = prep["out_channels"]
    cdt = prep["compute_dtype"]
    cdt_size = jnp.dtype(cdt).itemsize

    # Resident-weight guard: 3 bf16 weight matrices (double-buffered by the
    # pipeline) must fit comfortably in v7x's 64 MiB physical VMEM.
    resident_w_bytes = 2 * cdt_size * (c_in * cp + cp * cp + cp * op)
    if resident_w_bytes > 48 * 1024 * 1024:
        # TODO(synk): K-tiled / streamed-weight fallback (second grid axis over
        # cp with an f32 accumulator) for very large in_channels on v7x.
        raise NotImplementedError("in_channels too large for resident weights in VMEM")

    # Tile selection:
    #  * >= 2 tiles whenever B allows it, so both v7x TensorCores get work.
    #  * tb = ceil(B / n_tiles) rounded to the sublane -> worst-case padding is
    #    < 8 rows per tile (no ~2x waste for B just above a tile multiple).
    n_tiles = max(pl.cdiv(B, block_b), 2 if B >= 2 * SUBLANE else 1)
    tb = _round_up(pl.cdiv(B, n_tiles), SUBLANE)
    n_tiles = pl.cdiv(B, tb)
    bp = n_tiles * tb

    x_in = x if bp == B else jnp.pad(x, ((0, bp - B), (0, 0)))  # rows only, no cast

    grid = (n_tiles,)

    weight_keys = ("w1", "b1", "w2", "b2", "w3", "b3")
    w_bytes = sum(prep[k].size * prep[k].dtype.itemsize for k in weight_keys)
    flops = 2 * bp * (c_in * cp + cp * cp + cp * op)
    bytes_accessed = x_in.size * x_in.dtype.itemsize + w_bytes + bp * op * cdt_size
    cost = pl.CostEstimate(flops=flops, transcendentals=0,
                           bytes_accessed=bytes_accessed)

    # VMEM budget: double-buffered x/out tiles + resident weights + f32
    # intermediates, with 2x headroom, clamped to [32 MiB, 64 MiB] (portable
    # across v5e/v6e 128 MiB and v7x 64 MiB physical VMEM).
    tile_bytes = (2 * tb * c_in * 4            # x tiles (f32, double-buffered)
                  + 2 * tb * op * cdt_size     # out tiles (bf16, double-buffered)
                  + resident_w_bytes + 2 * 4 * (2 * cp + op)   # weights + biases
                  + 3 * tb * cp * 4)           # f32 intermediates
    vmem_limit = min(64 * 1024 * 1024, max(32 * 1024 * 1024, 2 * tile_bytes))

    out_pad = pl.pallas_call(
        basic_mlp_kernel,
        out_shape=jax.ShapeDtypeStruct((bp, op), cdt),          # bf16 writeback
        grid=grid,
        in_specs=[
            pl.BlockSpec((tb, c_in), lambda i: (i, 0)),  # x: streamed f32 batch tiles
            pl.BlockSpec((c_in, cp), lambda i: (0, 0)),  # w1: resident
            pl.BlockSpec((1, cp), lambda i: (0, 0)),     # b1: resident
            pl.BlockSpec((cp, cp), lambda i: (0, 0)),    # w2: resident
            pl.BlockSpec((1, cp), lambda i: (0, 0)),     # b2: resident
            pl.BlockSpec((cp, op), lambda i: (0, 0)),    # w3: resident
            pl.BlockSpec((1, op), lambda i: (0, 0)),     # b3: resident
        ],
        out_specs=pl.BlockSpec((tb, op), lambda i: (i, 0)),      # lane-dense stores
        compiler_params=pltpu.CompilerParams(
            dimension_semantics=("parallel",),           # megacore sharding on v7x
            vmem_limit_bytes=vmem_limit,
        ),
        cost_estimate=cost,
    )(x_in, prep["w1"], prep["b1"], prep["w2"], prep["b2"], prep["w3"], prep["b3"])

    return out_pad[:B, :out_ch].astype(x.dtype)


def init_params(key, in_channels, out_channels):
    """Deterministic synthetic parameters with PyTorch Linear shapes."""
    ks = jax.random.split(key, 6)
    scale = 1.0 / jnp.sqrt(in_channels)
    return {
        "w1": jax.random.uniform(ks[0], (in_channels, in_channels), jnp.float32, -scale, scale),
        "b1": jax.random.uniform(ks[1], (in_channels,), jnp.float32, -scale, scale),
        "w2": jax.random.uniform(ks[2], (in_channels, in_channels), jnp.float32, -scale, scale),
        "b2": jax.random.uniform(ks[3], (in_channels,), jnp.float32, -scale, scale),
        "w3": jax.random.uniform(ks[4], (out_channels, in_channels), jnp.float32, -scale, scale),
        "b3": jax.random.uniform(ks[5], (out_channels,), jnp.float32, -scale, scale),
    }


def reference_mlp(x, p):
    h = x @ p["w1"].T + p["b1"]
    h = jnp.where(h >= 0, h, LEAKY_SLOPE * h)
    h = h @ p["w2"].T + p["b2"]
    h = jnp.where(h >= 0, h, LEAKY_SLOPE * h)
    return h @ p["w3"].T + p["b3"]


if __name__ == "__main__":
    in_channels, out_channels, batch = 32, 16, 8

    key = jax.random.PRNGKey(0)
    kx, kp = jax.random.split(key)
    x = jax.random.normal(kx, (batch, in_channels), jnp.float32)
    params = init_params(kp, in_channels, out_channels)

    prep = prepare_params(params)                 # one-time weight prep (bf16, padded)
    out = basic_mlp(x, prep)
    out = jax.block_until_ready(out)

    ref = reference_mlp(x, params)                # f32 reference
    assert out.shape == (batch, out_channels)
    # bf16 MXU operands + bf16 output store with f32 accumulation -> loose tol.
    assert jnp.allclose(out, ref, atol=5e-2, rtol=5e-2)

    print("KERNEL_OK")
</pallas_src>

<mosaic_0001>
module attributes {stable_mosaic.version = 11 : i64} {
  func.func @basic_mlp_kernel(%arg0: i32, %arg1: memref<8x32xf32, #tpu.memory_space<vmem>>, %arg2: memref<32x128xbf16, #tpu.memory_space<vmem>>, %arg3: memref<1x128xf32, #tpu.memory_space<vmem>>, %arg4: memref<128x128xbf16, #tpu.memory_space<vmem>>, %arg5: memref<1x128xf32, #tpu.memory_space<vmem>>, %arg6: memref<128x128xbf16, #tpu.memory_space<vmem>>, %arg7: memref<1x128xf32, #tpu.memory_space<vmem>>, %arg8: memref<8x128xbf16, #tpu.memory_space<vmem>>) attributes {dimension_semantics = [#tpu.dimension_semantics<parallel>], iteration_bounds = array<i64: 1>, scalar_prefetch = 0 : i64, scratch_operands = 0 : i64, tpu.core_type = #tpu.core_type<tc>, window_params = [{transform_indices = @transform_0, window_bounds = array<i64: 8, 32>}, {pipeline_mode = #tpu.pipeline_mode<synchronous>, transform_indices = @transform_1, window_bounds = array<i64: 32, 128>}, {pipeline_mode = #tpu.pipeline_mode<synchronous>, transform_indices = @transform_2, window_bounds = array<i64: 1, 128>}, {pipeline_mode = #tpu.pipeline_mode<synchronous>, transform_indices = @transform_3, window_bounds = array<i64: 128, 128>}, {pipeline_mode = #tpu.pipeline_mode<synchronous>, transform_indices = @transform_4, window_bounds = array<i64: 1, 128>}, {pipeline_mode = #tpu.pipeline_mode<synchronous>, transform_indices = @transform_5, window_bounds = array<i64: 128, 128>}, {pipeline_mode = #tpu.pipeline_mode<synchronous>, transform_indices = @transform_6, window_bounds = array<i64: 1, 128>}, {transform_indices = @transform_7, window_bounds = array<i64: 8, 128>}]} {
    %c0 = arith.constant 0 : index
    %c0_0 = arith.constant 0 : index
    %0 = vector.load %arg1[%c0, %c0_0] : memref<8x32xf32, #tpu.memory_space<vmem>>, vector<8x32xf32>
    %1 = arith.truncf %0 : vector<8x32xf32> to vector<8x32xbf16>
    %c0_1 = arith.constant 0 : index
    %c0_2 = arith.constant 0 : index
    %2 = vector.load %arg2[%c0_1, %c0_2] : memref<32x128xbf16, #tpu.memory_space<vmem>>, vector<32x128xbf16>
    %cst = arith.constant dense<0.000000e+00> : vector<8x128xf32>
    %3 = tpu.matmul %1, %2, %cst {dimension_numbers = #tpu.dot_dimension_numbers<[1], [0], [0], [1], [0, 0, 1, 1], [], []>} : vector<8x32xbf16>, vector<32x128xbf16>, vector<8x128xf32> -> vector<8x128xf32>
    %c0_3 = arith.constant 0 : index
    %c0_4 = arith.constant 0 : index
    %4 = vector.load %arg3[%c0_3, %c0_4] : memref<1x128xf32, #tpu.memory_space<vmem>>, vector<1x128xf32>
    %5 = vector.broadcast %4 : vector<1x128xf32> to vector<8x128xf32>
    %6 = arith.addf %3, %5 : vector<8x128xf32>
    %cst_5 = arith.constant 0.000000e+00 : f32
    %7 = vector.broadcast %cst_5 : f32 to vector<8x128xf32>
    %8 = arith.cmpf oge, %6, %7 : vector<8x128xf32>
    %cst_6 = arith.constant 0.00999999977 : f32
    %9 = vector.broadcast %cst_6 : f32 to vector<8x128xf32>
    %10 = arith.mulf %9, %6 : vector<8x128xf32>
    %11 = arith.select %8, %6, %10 : vector<8x128xi1>, vector<8x128xf32>
    %12 = arith.truncf %11 : vector<8x128xf32> to vector<8x128xbf16>
    %c0_7 = arith.constant 0 : index
    %c0_8 = arith.constant 0 : index
    %13 = vector.load %arg4[%c0_7, %c0_8] : memref<128x128xbf16, #tpu.memory_space<vmem>>, vector<128x128xbf16>
    %cst_9 = arith.constant dense<0.000000e+00> : vector<8x128xf32>
    %14 = tpu.matmul %12, %13, %cst_9 {dimension_numbers = #tpu.dot_dimension_numbers<[1], [0], [0], [1], [0, 0, 1, 1], [], []>} : vector<8x128xbf16>, vector<128x128xbf16>, vector<8x128xf32> -> vector<8x128xf32>
    %c0_10 = arith.constant 0 : index
    %c0_11 = arith.constant 0 : index
    %15 = vector.load %arg5[%c0_10, %c0_11] : memref<1x128xf32, #tpu.memory_space<vmem>>, vector<1x128xf32>
    %16 = vector.broadcast %15 : vector<1x128xf32> to vector<8x128xf32>
    %17 = arith.addf %14, %16 : vector<8x128xf32>
    %cst_12 = arith.constant 0.000000e+00 : f32
    %18 = vector.broadcast %cst_12 : f32 to vector<8x128xf32>
    %19 = arith.cmpf oge, %17, %18 : vector<8x128xf32>
    %cst_13 = arith.constant 0.00999999977 : f32
    %20 = vector.broadcast %cst_13 : f32 to vector<8x128xf32>
    %21 = arith.mulf %20, %17 : vector<8x128xf32>
    %22 = arith.select %19, %17, %21 : vector<8x128xi1>, vector<8x128xf32>
    %23 = arith.truncf %22 : vector<8x128xf32> to vector<8x128xbf16>
    %c0_14 = arith.constant 0 : index
    %c0_15 = arith.constant 0 : index
    %24 = vector.load %arg6[%c0_14, %c0_15] : memref<128x128xbf16, #tpu.memory_space<vmem>>, vector<128x128xbf16>
    %cst_16 = arith.constant dense<0.000000e+00> : vector<8x128xf32>
    %25 = tpu.matmul %23, %24, %cst_16 {dimension_numbers = #tpu.dot_dimension_numbers<[1], [0], [0], [1], [0, 0, 1, 1], [], []>} : vector<8x128xbf16>, vector<128x128xbf16>, vector<8x128xf32> -> vector<8x128xf32>
    %c0_17 = arith.constant 0 : index
    %c0_18 = arith.constant 0 : index
    %26 = vector.load %arg7[%c0_17, %c0_18] : memref<1x128xf32, #tpu.memory_space<vmem>>, vector<1x128xf32>
    %27 = vector.broadcast %26 : vector<1x128xf32> to vector<8x128xf32>
    %28 = arith.addf %25, %27 : vector<8x128xf32>
    %29 = arith.truncf %28 : vector<8x128xf32> to vector<8x128xbf16>
    %c0_19 = arith.constant 0 : index
    %c0_20 = arith.constant 0 : index
    %30 = vector.load %arg8[%c0_19, %c0_20] : memref<8x128xbf16, #tpu.memory_space<vmem>>, vector<8x128xbf16>
    tpu.vector_store %arg8[%c0_19, %c0_20], %29 {strides = array<i32>} : memref<8x128xbf16, #tpu.memory_space<vmem>>, vector<8x128xbf16>,
    return
  }
  func.func @transform_0(%arg0: i32) -> (i32, i32) {
    %c0_i32 = arith.constant 0 : i32
    %c0_i32_0 = arith.constant 0 : i32
    return %arg0, %c0_i32 : i32, i32
  }
  func.func @transform_1(%arg0: i32) -> (i32, i32) {
    %c0_i32 = arith.constant 0 : i32
    %c0_i32_0 = arith.constant 0 : i32
    %c0_i32_1 = arith.constant 0 : i32
    return %c0_i32, %c0_i32_0 : i32, i32
  }
  func.func @transform_2(%arg0: i32) -> (i32, i32) {
    %c0_i32 = arith.constant 0 : i32
    %c0_i32_0 = arith.constant 0 : i32
    %c0_i32_1 = arith.constant 0 : i32
    return %c0_i32, %c0_i32_0 : i32, i32
  }
  func.func @transform_3(%arg0: i32) -> (i32, i32) {
    %c0_i32 = arith.constant 0 : i32
    %c0_i32_0 = arith.constant 0 : i32
    %c0_i32_1 = arith.constant 0 : i32
    return %c0_i32, %c0_i32_0 : i32, i32
  }
  func.func @transform_4(%arg0: i32) -> (i32, i32) {
    %c0_i32 = arith.constant 0 : i32
    %c0_i32_0 = arith.constant 0 : i32
    %c0_i32_1 = arith.constant 0 : i32
    return %c0_i32, %c0_i32_0 : i32, i32
  }
  func.func @transform_5(%arg0: i32) -> (i32, i32) {
    %c0_i32 = arith.constant 0 : i32
    %c0_i32_0 = arith.constant 0 : i32
    %c0_i32_1 = arith.constant 0 : i32
    return %c0_i32, %c0_i32_0 : i32, i32
  }
  func.func @transform_6(%arg0: i32) -> (i32, i32) {
    %c0_i32 = arith.constant 0 : i32
    %c0_i32_0 = arith.constant 0 : i32
    %c0_i32_1 = arith.constant 0 : i32
    return %c0_i32, %c0_i32_0 : i32, i32
  }
  func.func @transform_7(%arg0: i32) -> (i32, i32) {
    %c0_i32 = arith.constant 0 : i32
    %c0_i32_0 = arith.constant 0 : i32
    return %arg0, %c0_i32 : i32, i32
  }
}

</mosaic_0001>

<bundles_post_ra>
// kernel: tpu_custom_call.1
= control target key start
LH: loop header
LB: loop body
LE: loop exit
PB: predicated region body
PF: predicated region fallthrough
CT: control target
= control target key end

     0   :  { %12 = vsyncpa [#allocation3], 0  ;;  %s619_s0 = inlined_call_operand.hbm [shape: f32[8,32], index: 0, kind: input, shape index: {}]   ;;  %s620_s1 = inlined_call_operand.hbm [shape: bf16[32,128], index: 1, kind: input, shape index: {}]   ;;  %s621_s2 = inlined_call_operand.vmem [shape: f32[1,128], index: 2, kind: input, shape index: {}]   ;;  %s622_s3 = inlined_call_operand.hbm [shape: bf16[128,128], index: 3, kind: input, shape index: {}]   ;;  %s623_s4 = inlined_call_operand.vmem [shape: f32[1,128], index: 4, kind: input, shape index: {}]   ;;  %s624_s5 = inlined_call_operand.hbm [shape: bf16[128,128], index: 5, kind: input, shape index: {}]   ;;  %s625_s6 = inlined_call_operand.vmem [shape: f32[1,128], index: 6, kind: input, shape index: {}]   ;;  %s626_s7 = inlined_call_operand.hbm [shape: bf16[8,128], index: 7, kind: output, shape index: {}]  }
   0x1   :  { %13 = vsyncpa [#allocation6], 0 }
   0x2   :  { %14 = vsyncpa [#allocation9], 0  ;;  %s31_s26 = sshll.u32 %s620_s1, 4  ;;  %s32_s26 = int_to_ptr.hbm [resolvable:$true] %s31_s26 }
   0x3   :  { %15 = vsyncpa [#allocation4], 0  ;;  %s548_s27 = smov [#allocation5]   ;;  %s21_s8 = sshll.u32 %s619_s0, 4  ;;  %s22_s8 = int_to_ptr.hbm [resolvable:$true] %s21_s8 }
   0x4   :  { %s33_s28 = sshll.u32 %s548_s27, 4  ;;  %s549_s9 = smov 64   ;;  %s34_s28 = int_to_ptr.vmem [resolvable:$true] %s33_s28 }
   0x5   :  { %s550_s10 = smov 4   ;;  %s551_s11 = smov [#allocation2]  }
   0x6   :  { %39 = dma.hbm_to_vmem [thread:$0]  %s32_s26, 256, %s34_s28, [#allocation6], %s549_s9, %s549_s9, %s550_s10  }
   0x7   :  { %s23_s12 = sshll.u32 %s551_s11, 4  ;;  %s46_s15 = sshll.u32 %s622_s3, 4  ;;  %s24_s12 = int_to_ptr.vmem [resolvable:$true] %s23_s12  ;;  %s47_s15 = int_to_ptr.hbm [resolvable:$true] %s46_s15 }
   0x8   :  { %26 = dma.hbm_to_vmem [thread:$0]  %s22_s8, 128, %s24_s12, [#allocation3]  }
   0x9   :  { %s61_s17 = sshll.u32 %s624_s5, 4  ;;  %s552_s18 = smov [#allocation7]   ;;  %s62_s17 = int_to_ptr.hbm [resolvable:$true] %s61_s17 }
   0xa   :  { %s48_s19 = sshll.u32 %s552_s18, 4  ;;  %s553_s0 = smov [#allocation8]   ;;  %s49_s19 = int_to_ptr.vmem [resolvable:$true] %s48_s19 }
   0xb   :  { %54 = dma.hbm_to_vmem [thread:$0]  %s47_s15, 1024, %s49_s19, [#allocation6], %s549_s9, %s549_s9, %s550_s10  }
   0xc   :  { %s63_s20 = sshll.u32 %s553_s0, 4  ;;  %s64_s20 = int_to_ptr.vmem [resolvable:$true] %s63_s20 }
   0xd   :  { %69 = dma.hbm_to_vmem [thread:$0]  %s62_s17, 1024, %s64_s20, [#allocation9], %s549_s9, %s549_s9, %s550_s10  }
   0xe   :  { %540 = dma.done.wait [#allocation3], 128  }
   0xf   :  { %541 = vsyncadd [#allocation3], 4294967168 }
  0x10   :  { %542 = dma.done.wait [#allocation6], 1280  }
  0x11   :  { %543 = vsyncadd [#allocation6], 4294966016 }
  0x12   :  { %544 = dma.done.wait [#allocation9], 1024  }
  0x13   :  { %545 = vsyncadd [#allocation9], 4294966272  ;;  %v393_v0 = vld [vmem:[#allocation5 + $0x8] sm:$0xff]  ;;  %v392_v2 = vld [vmem:[#allocation5] sm:$0xff]  ;;  %vm111_vm0 = vcmask 261120   ;;  %s554_s24 = smov [#allocation10]  }
  0x14   :  { %v401_v1 = vld [vmem:[#allocation7 + $0x38] sm:$0xff]  ;;  %121 = vmatpush.bf16.msra.mxu0 %v393_v0  ;;  %v89_v3 = vld [vmem:[#allocation2] sm:$0xff]  ;;  %v400_v4 = vld [vmem:[#allocation7 + $0x30] sm:$0xff]  ;;  %s305_s25 = sshll.u32 %s554_s24, 4  ;;  %s307_s28 = sshll.u32 %s626_s7, 4  ;;  %s306_s25 = int_to_ptr.vmem [resolvable:$true] %s305_s25  ;;  %s308_s28 = int_to_ptr.hbm [resolvable:$true] %s307_s28 }
  0x15   :  { %200 = vmatpush.bf16.msra.mxu1 %v401_v1  ;;  %v90_v5 = vpack.c.bf16 %v89_v3, %v89_v3  ;;  %v399_v6 = vld [vmem:[#allocation7 + $0x28] sm:$0xff]  ;;  %v398_v7 = vld [vmem:[#allocation7 + $0x20] sm:$0xff]  ;;  %v397_v8 = vld [vmem:[#allocation7 + $0x18] sm:$0xff] }
  0x16   :  { %v396_v9 = vld [vmem:[#allocation7 + $0x10] sm:$0xff]  ;;  %v395_v10 = vld [vmem:[#allocation7 + $0x8] sm:$0xff]  ;;  %v394_v11 = vld [vmem:[#allocation7] sm:$0xff] }
  0x17   :  { %v409_v12 = vld [vmem:[#allocation8 + $0x38] sm:$0xff]  ;;  %v408_v13 = vld [vmem:[#allocation8 + $0x30] sm:$0xff]  ;;  %v407_v14 = vld [vmem:[#allocation8 + $0x28] sm:$0xff] }
  0x18   :  { %122 = vmatpush.bf16.msra.mxu0 %v392_v2  ;;  %285 = vmatpush.bf16.msra.mxu2 %v409_v12  ;;  %v406_v15 = vld [vmem:[#allocation8 + $0x20] sm:$0xff]  ;;  %v405_v16 = vld [vmem:[#allocation8 + $0x18] sm:$0xff]  ;;  %v404_v17 = vld [vmem:[#allocation8 + $0x10] sm:$0xff] }
  0x19   :  { %201 = vmatpush.bf16.msra.mxu1 %v400_v4  ;;  %v417_v18 = vld [vmem:[%s621_s2] ss:$0 sm:$0xff]  ;;  %v402_v26 = vld [vmem:[#allocation8] sm:$0xff] }
  0x1a   :  { %v403_v25 = vld [vmem:[#allocation8 + $0x8] sm:$0xff] }
  0x1b   :  { %327 = vmatmul.msk.bf16.vlgmr.msra.gmra.mxu0 %vm111_vm0, %v90_v5  ;;  %v418_v27 = vld [vmem:[%s623_s4] ss:$0 sm:$0xff] }
  0x1c   :  { %286 = vmatpush.bf16.msra.mxu2 %v408_v13  ;;  %v419_v34 = vld [vmem:[%s625_s6] ss:$0 sm:$0xff] }
  0x1d   :  { %202 = vmatpush.bf16.msra.mxu1 %v399_v6 }
  0x20   :  { %287 = vmatpush.bf16.msra.mxu2 %v407_v14 }
  0x21   :  { %203 = vmatpush.bf16.msra.mxu1 %v398_v7 }
  0x24   :  { %288 = vmatpush.bf16.msra.mxu2 %v406_v15 }
  0x25   :  { %204 = vmatpush.bf16.msra.mxu1 %v397_v8 }
  0x28   :  { %289 = vmatpush.bf16.msra.mxu2 %v405_v16 }
  0x29   :  { %205 = vmatpush.bf16.msra.mxu1 %v396_v9 }
  0x2c   :  { %290 = vmatpush.bf16.msra.mxu2 %v404_v17 }
  0x2d   :  { %206 = vmatpush.bf16.msra.mxu1 %v395_v10 }
  0x30   :  { %291 = vmatpush.bf16.msra.mxu2 %v403_v25 }
  0x31   :  { %207 = vmatpush.bf16.msra.mxu1 %v394_v11 }
  0x34   :  { %292 = vmatpush.bf16.msra.mxu2 %v402_v26 }
  0x98   :  { %v124_v19 = vpop.f32.mrf.mxu0 }
  0x99   :  { %v125_v20 = vadd.f32 %v417_v18, %v124_v19 }
  0x9b   :  { %v129_v21 = vmul.f32 0.01, %v125_v20  ;;  %vm128_vm1 = vcmp.ge.f32.partialorder %v125_v20, 0.0 }
  0x9d   :  { %v130_v22 = vsel %vm128_vm1, %v125_v20, %v129_v21 }
  0x9e   :  { %v131_v23 = vpack.c.bf16 %v130_v22, %v130_v22 }
  0xa0   :  { %v126_v24 = vpop.f32.mrf.mxu0  ;;  %208 = vmatmul.bf16.vlgmr.msra.gmra.mxu1 %v131_v23 }
 0x11d   :  { %v209_v28 = vpop.f32.mrf.mxu1 }
 0x11e   :  { %v210_v29 = vadd.f32 %v418_v27, %v209_v28 }
 0x120   :  { %v214_v30 = vmul.f32 0.01, %v210_v29  ;;  %vm213_vm2 = vcmp.ge.f32.partialorder %v210_v29, 0.0 }
 0x122   :  { %v215_v31 = vsel %vm213_vm2, %v210_v29, %v214_v30 }
 0x123   :  { %v216_v32 = vpack.c.bf16 %v215_v31, %v215_v31 }
 0x125   :  { %v211_v33 = vpop.f32.mrf.mxu1  ;;  %293 = vmatmul.bf16.vlgmr.msra.gmra.mxu2 %v216_v32 }
 0x1a8   :  { %v294_v35 = vpop.f32.mrf.mxu2 }
 0x1a9   :  { %v295_v36 = vadd.f32 %v419_v34, %v294_v35 }
 0x1ab   :  { %v298_v37 = vpack.c.bf16 %v295_v36, %v295_v36 }
 0x1ad   :  { %299 = vst [vmem:[#allocation10] sm:$0xf] %v298_v37 }
 0x1ae   :  { %310 = dma.vmem_to_hbm [thread:$0]  %s306_s25, 64, %s308_s28, [#allocation4]  }
 0x1b0   :  { %v296_v38 = vpop.f32.mrf.mxu2 }
 0x1b1   :  { %546 = dma.done.wait [#allocation4], 64  }
 0x1b2   :  { %547 = vsyncadd [#allocation4], 4294967232 }
 0x1b3   :  { %315 = vsyncpa [#allocation3], 1 }
 0x1b4   :  { %316 = vsyncpa [#allocation6], 1 }
 0x1b5   :  { %317 = vsyncpa [#allocation9], 1 }
 0x1b6   :  { %318 = vsyncpa [#allocation4], 1 }

</bundles_post_ra>
